<compile_context>
chip_gen: v7x
topology: tpu7x:2x2x1
jax: 0.10.0
libtpu: 0.0.40
codegen_flags: <defaults>
</compile_context>

<pallas_src>
from functools import partial

import jax
import jax.numpy as jnp
from jax import lax
from jax.experimental import pallas as pl
from jax.experimental.pallas import tpu as pltpu


def _round_up(x, m):
    return ((x + m - 1) // m) * m


def _sad_kernel(x_ref, w_ref, b_ref, o_ref, *, k, inv_temp, inv_keep,
                unroll, use_pow, pow_n):
    # x_ref: (TB, D)  w_ref: (D, D)  b_ref: (1, D)  o_ref: (TB, D)
    x = x_ref[...].astype(jnp.float32)

    # mask logits = Linear(feature) on the MXU (f32 in / f32 acc)
    m = jnp.dot(x, w_ref[...], preferred_element_type=jnp.float32) + b_ref[...]

    # Hoist the row-max: one XLU reduction total instead of one per iteration.
    # (logits - max <= 0, so the exp argument stays overflow-safe.)
    m_max = jnp.max(m, axis=1, keepdims=True)
    m_shift = (m - m_max) * inv_temp

    if use_pow:
        # 1/temp is a small integer n: exp((m + log w)/temp) == exp(m/temp)*w^n.
        # Hoist the exp; the loop body is multiplies + one row-sum only.
        e_base = jnp.exp(m_shift)

        def body(_, y):
            w = jnp.maximum(1.0 - y, 0.0)       # guard against fp overshoot
            wn = w
            for _i in range(pow_n - 1):         # w**n via repeated multiply
                wn = wn * w
            e = e_base * wn
            s = jnp.sum(e, axis=1, keepdims=True)
            y1 = e * (1.0 / s)                  # exact (TB,1) divide + broadcast mul
            return y + y1 * w
    else:
        # General-temp fallback: exact log/exp path (2 EUP ops / elem / iter).
        def body(_, y):
            w = jnp.maximum(1.0 - y, 0.0)
            logw = jnp.log(w + 1e-12)
            e = jnp.exp(m_shift + logw * inv_temp)
            s = jnp.sum(e, axis=1, keepdims=True)
            y1 = e * (1.0 / s)
            return y + y1 * w

    y = lax.fori_loop(0, k, body, jnp.zeros_like(m), unroll=unroll)

    mask = (1.0 - y) * inv_keep                 # 1/(1-p) folded into a multiply
    o_ref[...] = (x * mask).astype(o_ref.dtype)


def _build_call(kernel, BP, TB, D, out_dtype, cost, buffered_weight):
    w_kwargs = dict(pipeline_mode=pl.Buffered(1)) if buffered_weight else {}
    return pl.pallas_call(
        kernel,
        out_shape=jax.ShapeDtypeStruct((BP, D), out_dtype),
        grid_spec=pl.GridSpec(
            grid=(BP // TB,),
            in_specs=[
                pl.BlockSpec((TB, D), lambda i: (i, 0)),              # x: batch-tiled
                pl.BlockSpec((D, D), lambda i: (0, 0), **w_kwargs),   # W: resident
                pl.BlockSpec((1, D), lambda i: (0, 0), **w_kwargs),   # bias: resident
            ],
            out_specs=pl.BlockSpec((TB, D), lambda i: (i, 0)),
        ),
        compiler_params=pltpu.CompilerParams(
            dimension_semantics=("parallel",),      # shards batch tiles across TCs
            vmem_limit_bytes=32 * 1024 * 1024,
        ),
        cost_estimate=cost,
    )


def soft_attention_drop(feature, weight_t, bias, *, temp, p):
    """feature: (B, D) f32. weight_t: (D, D) = W.T of Linear(D, D). bias: (D,)."""
    B, D = feature.shape
    k = int(round(D * p))
    inv_temp = 1.0 / float(temp)
    pow_n = int(round(inv_temp))
    use_pow = abs(inv_temp - pow_n) < 1e-9 and 1 <= pow_n <= 4

    # Batch tile: small enough to avoid vreg spills in the unrolled loop, and
    # split into >=2 grid steps when B allows (v7x has 2 TensorCores).
    TB = min(128, _round_up(max((B + 1) // 2, 1), 8))
    TB = min(TB, _round_up(B, 8))
    BP = _round_up(B, TB)

    x_p = feature if BP == B else jnp.pad(feature, ((0, BP - B), (0, 0)))
    w32 = weight_t.astype(jnp.float32)
    b2d = bias.astype(jnp.float32).reshape(1, D)

    unroll = min(max(k, 1), 8)

    kernel = partial(_sad_kernel, k=k, inv_temp=inv_temp,
                     inv_keep=float(1.0 / (1.0 - p)), unroll=unroll,
                     use_pow=use_pow, pow_n=pow_n)

    cost = pl.CostEstimate(
        flops=2 * BP * D * D + BP * D * (6 * k + 4),
        transcendentals=BP * D * (1 if use_pow else 2 * k),
        bytes_accessed=4 * (2 * BP * D + D * D + D),
    )

    try:
        out_p = _build_call(kernel, BP, TB, D, feature.dtype, cost,
                            buffered_weight=True)(x_p, w32, b2d)
    except Exception:
        # Fallback if this jax build rejects pipeline_mode / Buffered(1).
        out_p = _build_call(kernel, BP, TB, D, feature.dtype, cost,
                            buffered_weight=False)(x_p, w32, b2d)

    return out_p if BP == B else out_p[:B]


def _reference(feature, weight_t, bias, *, temp, p):
    """Pure-JAX reference reproducing the PyTorch forward exactly."""
    m = feature @ weight_t + bias
    y = jnp.zeros_like(m)
    k = int(round(m.shape[1] * p))
    for _ in range(k):
        w = 1.0 - y
        logw = jnp.log(w + 1e-12)
        y1 = (m + logw) / temp
        y1 = y1 - jnp.max(y1, axis=1, keepdims=True)
        y1 = jnp.exp(y1) / jnp.sum(jnp.exp(y1), axis=1, keepdims=True)
        y = y + y1 * w
    mask = (1.0 - y) / (1.0 - p)
    return feature * mask


if __name__ == "__main__":
    # args equivalent
    HIDDEN = 32
    TEMP = 0.5
    DROP_P = 0.25
    BATCH = 8

    key = jax.random.PRNGKey(0)
    k1, k2, k3 = jax.random.split(key, 3)

    # Deterministic parameter init (Linear(dim, dim)): weight (out,in), bias (out,)
    bound = 1.0 / jnp.sqrt(HIDDEN)
    weight = jax.random.uniform(k1, (HIDDEN, HIDDEN), jnp.float32, -bound, bound)
    bias = jax.random.uniform(k2, (HIDDEN,), jnp.float32, -bound, bound)
    weight_t = weight.T  # (in, out) so kernel computes x @ W.T + b

    feature = jax.random.normal(k3, (BATCH, HIDDEN), jnp.float32)

    out = soft_attention_drop(feature, weight_t, bias, temp=TEMP, p=DROP_P)
    out = jax.block_until_ready(out)

    ref = _reference(feature, weight_t, bias, temp=TEMP, p=DROP_P)
    assert out.shape == (BATCH, HIDDEN)
    assert jnp.allclose(out, ref, atol=1e-4, rtol=1e-4), "mismatch vs reference"

    print("KERNEL_OK")
</pallas_src>

<mosaic_0001>
module attributes {stable_mosaic.version = 11 : i64} {
  func.func @_sad_kernel(%arg0: i32, %arg1: memref<8x32xf32, #tpu.memory_space<vmem>>, %arg2: memref<32x32xf32, #tpu.memory_space<vmem>>, %arg3: memref<1x32xf32, #tpu.memory_space<vmem>>, %arg4: memref<8x32xf32, #tpu.memory_space<vmem>>) attributes {dimension_semantics = [#tpu.dimension_semantics<parallel>], iteration_bounds = array<i64: 1>, scalar_prefetch = 0 : i64, scratch_operands = 0 : i64, tpu.core_type = #tpu.core_type<tc>, window_params = [{transform_indices = @transform_0, window_bounds = array<i64: 8, 32>}, {pipeline_mode = #tpu.pipeline_mode<synchronous>, transform_indices = @transform_1, window_bounds = array<i64: 32, 32>}, {pipeline_mode = #tpu.pipeline_mode<synchronous>, transform_indices = @transform_2, window_bounds = array<i64: 1, 32>}, {transform_indices = @transform_3, window_bounds = array<i64: 8, 32>}]} {
    %c0 = arith.constant 0 : index
    %c0_0 = arith.constant 0 : index
    %0 = vector.load %arg1[%c0, %c0_0] : memref<8x32xf32, #tpu.memory_space<vmem>>, vector<8x32xf32>
    %c0_1 = arith.constant 0 : index
    %c0_2 = arith.constant 0 : index
    %1 = vector.load %arg2[%c0_1, %c0_2] : memref<32x32xf32, #tpu.memory_space<vmem>>, vector<32x32xf32>
    %cst = arith.constant dense<0.000000e+00> : vector<8x32xf32>
    %2 = tpu.matmul %0, %1, %cst {dimension_numbers = #tpu.dot_dimension_numbers<[1], [0], [0], [1], [0, 0, 1, 1], [], []>} : vector<8x32xf32>, vector<32x32xf32>, vector<8x32xf32> -> vector<8x32xf32>
    %c0_3 = arith.constant 0 : index
    %c0_4 = arith.constant 0 : index
    %3 = vector.load %arg3[%c0_3, %c0_4] : memref<1x32xf32, #tpu.memory_space<vmem>>, vector<1x32xf32>
    %4 = vector.broadcast %3 : vector<1x32xf32> to vector<8x32xf32>
    %5 = arith.addf %2, %4 : vector<8x32xf32>
    %cst_5 = arith.constant dense<0xFF800000> : vector<8xf32>
    %6 = vector.multi_reduction <maximumf>, %5, %cst_5 [1] : vector<8x32xf32> to vector<8xf32>
    %7 = vector.shape_cast %6 : vector<8xf32> to vector<8x1xf32>
    %8 = vector.broadcast %7 : vector<8x1xf32> to vector<8x32xf32>
    %9 = arith.subf %5, %8 : vector<8x32xf32>
    %cst_6 = arith.constant 2.000000e+00 : f32
    %10 = vector.broadcast %cst_6 : f32 to vector<8x32xf32>
    %11 = arith.mulf %9, %10 : vector<8x32xf32>
    %12 = math.exp %11 : vector<8x32xf32>
    %cst_7 = arith.constant 0.000000e+00 : f32
    %13 = vector.broadcast %cst_7 : f32 to vector<8x32xf32>
    %c0_i32 = arith.constant 0 : i32
    %cst_8 = arith.constant 1.000000e+00 : f32
    %14 = vector.broadcast %cst_8 : f32 to vector<8x32xf32>
    %15 = arith.subf %14, %13 : vector<8x32xf32>
    %cst_9 = arith.constant 0.000000e+00 : f32
    %16 = vector.broadcast %cst_9 : f32 to vector<8x32xf32>
    %17 = arith.maximumf %15, %16 : vector<8x32xf32>
    %18 = arith.mulf %17, %17 : vector<8x32xf32>
    %19 = arith.mulf %12, %18 : vector<8x32xf32>
    %cst_10 = arith.constant dense<0.000000e+00> : vector<8xf32>
    %20 = vector.multi_reduction <add>, %19, %cst_10 [1] : vector<8x32xf32> to vector<8xf32>
    %21 = vector.shape_cast %20 : vector<8xf32> to vector<8x1xf32>
    %cst_11 = arith.constant 1.000000e+00 : f32
    %22 = vector.broadcast %cst_11 : f32 to vector<8x1xf32>
    %23 = arith.divf %22, %21 : vector<8x1xf32>
    %24 = vector.broadcast %23 : vector<8x1xf32> to vector<8x32xf32>
    %25 = arith.mulf %19, %24 : vector<8x32xf32>
    %26 = arith.mulf %25, %17 : vector<8x32xf32>
    %27 = arith.addf %13, %26 : vector<8x32xf32>
    %c1_i32 = arith.constant 1 : i32
    %cst_12 = arith.constant 1.000000e+00 : f32
    %28 = vector.broadcast %cst_12 : f32 to vector<8x32xf32>
    %29 = arith.subf %28, %27 : vector<8x32xf32>
    %cst_13 = arith.constant 0.000000e+00 : f32
    %30 = vector.broadcast %cst_13 : f32 to vector<8x32xf32>
    %31 = arith.maximumf %29, %30 : vector<8x32xf32>
    %32 = arith.mulf %31, %31 : vector<8x32xf32>
    %33 = arith.mulf %12, %32 : vector<8x32xf32>
    %cst_14 = arith.constant dense<0.000000e+00> : vector<8xf32>
    %34 = vector.multi_reduction <add>, %33, %cst_14 [1] : vector<8x32xf32> to vector<8xf32>
    %35 = vector.shape_cast %34 : vector<8xf32> to vector<8x1xf32>
    %cst_15 = arith.constant 1.000000e+00 : f32
    %36 = vector.broadcast %cst_15 : f32 to vector<8x1xf32>
    %37 = arith.divf %36, %35 : vector<8x1xf32>
    %38 = vector.broadcast %37 : vector<8x1xf32> to vector<8x32xf32>
    %39 = arith.mulf %33, %38 : vector<8x32xf32>
    %40 = arith.mulf %39, %31 : vector<8x32xf32>
    %41 = arith.addf %27, %40 : vector<8x32xf32>
    %c2_i32 = arith.constant 2 : i32
    %cst_16 = arith.constant 1.000000e+00 : f32
    %42 = vector.broadcast %cst_16 : f32 to vector<8x32xf32>
    %43 = arith.subf %42, %41 : vector<8x32xf32>
    %cst_17 = arith.constant 0.000000e+00 : f32
    %44 = vector.broadcast %cst_17 : f32 to vector<8x32xf32>
    %45 = arith.maximumf %43, %44 : vector<8x32xf32>
    %46 = arith.mulf %45, %45 : vector<8x32xf32>
    %47 = arith.mulf %12, %46 : vector<8x32xf32>
    %cst_18 = arith.constant dense<0.000000e+00> : vector<8xf32>
    %48 = vector.multi_reduction <add>, %47, %cst_18 [1] : vector<8x32xf32> to vector<8xf32>
    %49 = vector.shape_cast %48 : vector<8xf32> to vector<8x1xf32>
    %cst_19 = arith.constant 1.000000e+00 : f32
    %50 = vector.broadcast %cst_19 : f32 to vector<8x1xf32>
    %51 = arith.divf %50, %49 : vector<8x1xf32>
    %52 = vector.broadcast %51 : vector<8x1xf32> to vector<8x32xf32>
    %53 = arith.mulf %47, %52 : vector<8x32xf32>
    %54 = arith.mulf %53, %45 : vector<8x32xf32>
    %55 = arith.addf %41, %54 : vector<8x32xf32>
    %c3_i32 = arith.constant 3 : i32
    %cst_20 = arith.constant 1.000000e+00 : f32
    %56 = vector.broadcast %cst_20 : f32 to vector<8x32xf32>
    %57 = arith.subf %56, %55 : vector<8x32xf32>
    %cst_21 = arith.constant 0.000000e+00 : f32
    %58 = vector.broadcast %cst_21 : f32 to vector<8x32xf32>
    %59 = arith.maximumf %57, %58 : vector<8x32xf32>
    %60 = arith.mulf %59, %59 : vector<8x32xf32>
    %61 = arith.mulf %12, %60 : vector<8x32xf32>
    %cst_22 = arith.constant dense<0.000000e+00> : vector<8xf32>
    %62 = vector.multi_reduction <add>, %61, %cst_22 [1] : vector<8x32xf32> to vector<8xf32>
    %63 = vector.shape_cast %62 : vector<8xf32> to vector<8x1xf32>
    %cst_23 = arith.constant 1.000000e+00 : f32
    %64 = vector.broadcast %cst_23 : f32 to vector<8x1xf32>
    %65 = arith.divf %64, %63 : vector<8x1xf32>
    %66 = vector.broadcast %65 : vector<8x1xf32> to vector<8x32xf32>
    %67 = arith.mulf %61, %66 : vector<8x32xf32>
    %68 = arith.mulf %67, %59 : vector<8x32xf32>
    %69 = arith.addf %55, %68 : vector<8x32xf32>
    %c4_i32 = arith.constant 4 : i32
    %cst_24 = arith.constant 1.000000e+00 : f32
    %70 = vector.broadcast %cst_24 : f32 to vector<8x32xf32>
    %71 = arith.subf %70, %69 : vector<8x32xf32>
    %cst_25 = arith.constant 0.000000e+00 : f32
    %72 = vector.broadcast %cst_25 : f32 to vector<8x32xf32>
    %73 = arith.maximumf %71, %72 : vector<8x32xf32>
    %74 = arith.mulf %73, %73 : vector<8x32xf32>
    %75 = arith.mulf %12, %74 : vector<8x32xf32>
    %cst_26 = arith.constant dense<0.000000e+00> : vector<8xf32>
    %76 = vector.multi_reduction <add>, %75, %cst_26 [1] : vector<8x32xf32> to vector<8xf32>
    %77 = vector.shape_cast %76 : vector<8xf32> to vector<8x1xf32>
    %cst_27 = arith.constant 1.000000e+00 : f32
    %78 = vector.broadcast %cst_27 : f32 to vector<8x1xf32>
    %79 = arith.divf %78, %77 : vector<8x1xf32>
    %80 = vector.broadcast %79 : vector<8x1xf32> to vector<8x32xf32>
    %81 = arith.mulf %75, %80 : vector<8x32xf32>
    %82 = arith.mulf %81, %73 : vector<8x32xf32>
    %83 = arith.addf %69, %82 : vector<8x32xf32>
    %c5_i32 = arith.constant 5 : i32
    %cst_28 = arith.constant 1.000000e+00 : f32
    %84 = vector.broadcast %cst_28 : f32 to vector<8x32xf32>
    %85 = arith.subf %84, %83 : vector<8x32xf32>
    %cst_29 = arith.constant 0.000000e+00 : f32
    %86 = vector.broadcast %cst_29 : f32 to vector<8x32xf32>
    %87 = arith.maximumf %85, %86 : vector<8x32xf32>
    %88 = arith.mulf %87, %87 : vector<8x32xf32>
    %89 = arith.mulf %12, %88 : vector<8x32xf32>
    %cst_30 = arith.constant dense<0.000000e+00> : vector<8xf32>
    %90 = vector.multi_reduction <add>, %89, %cst_30 [1] : vector<8x32xf32> to vector<8xf32>
    %91 = vector.shape_cast %90 : vector<8xf32> to vector<8x1xf32>
    %cst_31 = arith.constant 1.000000e+00 : f32
    %92 = vector.broadcast %cst_31 : f32 to vector<8x1xf32>
    %93 = arith.divf %92, %91 : vector<8x1xf32>
    %94 = vector.broadcast %93 : vector<8x1xf32> to vector<8x32xf32>
    %95 = arith.mulf %89, %94 : vector<8x32xf32>
    %96 = arith.mulf %95, %87 : vector<8x32xf32>
    %97 = arith.addf %83, %96 : vector<8x32xf32>
    %c6_i32 = arith.constant 6 : i32
    %cst_32 = arith.constant 1.000000e+00 : f32
    %98 = vector.broadcast %cst_32 : f32 to vector<8x32xf32>
    %99 = arith.subf %98, %97 : vector<8x32xf32>
    %cst_33 = arith.constant 0.000000e+00 : f32
    %100 = vector.broadcast %cst_33 : f32 to vector<8x32xf32>
    %101 = arith.maximumf %99, %100 : vector<8x32xf32>
    %102 = arith.mulf %101, %101 : vector<8x32xf32>
    %103 = arith.mulf %12, %102 : vector<8x32xf32>
    %cst_34 = arith.constant dense<0.000000e+00> : vector<8xf32>
    %104 = vector.multi_reduction <add>, %103, %cst_34 [1] : vector<8x32xf32> to vector<8xf32>
    %105 = vector.shape_cast %104 : vector<8xf32> to vector<8x1xf32>
    %cst_35 = arith.constant 1.000000e+00 : f32
    %106 = vector.broadcast %cst_35 : f32 to vector<8x1xf32>
    %107 = arith.divf %106, %105 : vector<8x1xf32>
    %108 = vector.broadcast %107 : vector<8x1xf32> to vector<8x32xf32>
    %109 = arith.mulf %103, %108 : vector<8x32xf32>
    %110 = arith.mulf %109, %101 : vector<8x32xf32>
    %111 = arith.addf %97, %110 : vector<8x32xf32>
    %c7_i32 = arith.constant 7 : i32
    %cst_36 = arith.constant 1.000000e+00 : f32
    %112 = vector.broadcast %cst_36 : f32 to vector<8x32xf32>
    %113 = arith.subf %112, %111 : vector<8x32xf32>
    %cst_37 = arith.constant 0.000000e+00 : f32
    %114 = vector.broadcast %cst_37 : f32 to vector<8x32xf32>
    %115 = arith.maximumf %113, %114 : vector<8x32xf32>
    %116 = arith.mulf %115, %115 : vector<8x32xf32>
    %117 = arith.mulf %12, %116 : vector<8x32xf32>
    %cst_38 = arith.constant dense<0.000000e+00> : vector<8xf32>
    %118 = vector.multi_reduction <add>, %117, %cst_38 [1] : vector<8x32xf32> to vector<8xf32>
    %119 = vector.shape_cast %118 : vector<8xf32> to vector<8x1xf32>
    %cst_39 = arith.constant 1.000000e+00 : f32
    %120 = vector.broadcast %cst_39 : f32 to vector<8x1xf32>
    %121 = arith.divf %120, %119 : vector<8x1xf32>
    %122 = vector.broadcast %121 : vector<8x1xf32> to vector<8x32xf32>
    %123 = arith.mulf %117, %122 : vector<8x32xf32>
    %124 = arith.mulf %123, %115 : vector<8x32xf32>
    %125 = arith.addf %111, %124 : vector<8x32xf32>
    %cst_40 = arith.constant 1.000000e+00 : f32
    %126 = vector.broadcast %cst_40 : f32 to vector<8x32xf32>
    %127 = arith.subf %126, %125 : vector<8x32xf32>
    %cst_41 = arith.constant 1.33333337 : f32
    %128 = vector.broadcast %cst_41 : f32 to vector<8x32xf32>
    %129 = arith.mulf %127, %128 : vector<8x32xf32>
    %130 = arith.mulf %0, %129 : vector<8x32xf32>
    %c0_42 = arith.constant 0 : index
    %c0_43 = arith.constant 0 : index
    %131 = vector.load %arg4[%c0_42, %c0_43] : memref<8x32xf32, #tpu.memory_space<vmem>>, vector<8x32xf32>
    tpu.vector_store %arg4[%c0_42, %c0_43], %130 {strides = array<i32>} : memref<8x32xf32, #tpu.memory_space<vmem>>, vector<8x32xf32>,
    return
  }
  func.func @transform_0(%arg0: i32) -> (i32, i32) {
    %c0_i32 = arith.constant 0 : i32
    %c0_i32_0 = arith.constant 0 : i32
    return %arg0, %c0_i32 : i32, i32
  }
  func.func @transform_1(%arg0: i32) -> (i32, i32) {
    %c0_i32 = arith.constant 0 : i32
    %c0_i32_0 = arith.constant 0 : i32
    %c0_i32_1 = arith.constant 0 : i32
    return %c0_i32, %c0_i32_0 : i32, i32
  }
  func.func @transform_2(%arg0: i32) -> (i32, i32) {
    %c0_i32 = arith.constant 0 : i32
    %c0_i32_0 = arith.constant 0 : i32
    %c0_i32_1 = arith.constant 0 : i32
    return %c0_i32, %c0_i32_0 : i32, i32
  }
  func.func @transform_3(%arg0: i32) -> (i32, i32) {
    %c0_i32 = arith.constant 0 : i32
    %c0_i32_0 = arith.constant 0 : i32
    return %arg0, %c0_i32 : i32, i32
  }
}

module attributes {stable_mosaic.version = 11 : i64} {
  func.func @_sad_kernel(%arg0: i32, %arg1: memref<8x32xf32, #tpu.memory_space<vmem>>, %arg2: memref<32x32xf32, #tpu.memory_space<vmem>>, %arg3: memref<1x32xf32, #tpu.memory_space<vmem>>, %arg4: memref<8x32xf32, #tpu.memory_space<vmem>>) attributes {dimension_semantics = [#tpu.dimension_semantics<parallel>], iteration_bounds = array<i64: 1>, scalar_prefetch = 0 : i64, scratch_operands = 0 : i64, tpu.core_type = #tpu.core_type<tc>, window_params = [{transform_indices = @transform_0, window_bounds = array<i64: 8, 32>}, {pipeline_mode = #tpu.pipeline_mode<synchronous>, transform_indices = @transform_1, window_bounds = array<i64: 32, 32>}, {pipeline_mode = #tpu.pipeline_mode<synchronous>, transform_indices = @transform_2, window_bounds = array<i64: 1, 32>}, {transform_indices = @transform_3, window_bounds = array<i64: 8, 32>}]} {
    %c0 = arith.constant 0 : index
    %c0_0 = arith.constant 0 : index
    %0 = vector.load %arg1[%c0, %c0_0] : memref<8x32xf32, #tpu.memory_space<vmem>>, vector<8x32xf32>
    %c0_1 = arith.constant 0 : index
    %c0_2 = arith.constant 0 : index
    %1 = vector.load %arg2[%c0_1, %c0_2] : memref<32x32xf32, #tpu.memory_space<vmem>>, vector<32x32xf32>
    %cst = arith.constant dense<0.000000e+00> : vector<8x32xf32>
    %2 = tpu.matmul %0, %1, %cst {dimension_numbers = #tpu.dot_dimension_numbers<[1], [0], [0], [1], [0, 0, 1, 1], [], []>} : vector<8x32xf32>, vector<32x32xf32>, vector<8x32xf32> -> vector<8x32xf32>
    %c0_3 = arith.constant 0 : index
    %c0_4 = arith.constant 0 : index
    %3 = vector.load %arg3[%c0_3, %c0_4] : memref<1x32xf32, #tpu.memory_space<vmem>>, vector<1x32xf32>
    %4 = vector.broadcast %3 : vector<1x32xf32> to vector<8x32xf32>
    %5 = arith.addf %2, %4 : vector<8x32xf32>
    %cst_5 = arith.constant dense<0xFF800000> : vector<8xf32>
    %6 = vector.multi_reduction <maximumf>, %5, %cst_5 [1] : vector<8x32xf32> to vector<8xf32>
    %7 = vector.shape_cast %6 : vector<8xf32> to vector<8x1xf32>
    %8 = vector.broadcast %7 : vector<8x1xf32> to vector<8x32xf32>
    %9 = arith.subf %5, %8 : vector<8x32xf32>
    %cst_6 = arith.constant 2.000000e+00 : f32
    %10 = vector.broadcast %cst_6 : f32 to vector<8x32xf32>
    %11 = arith.mulf %9, %10 : vector<8x32xf32>
    %12 = math.exp %11 : vector<8x32xf32>
    %cst_7 = arith.constant 0.000000e+00 : f32
    %13 = vector.broadcast %cst_7 : f32 to vector<8x32xf32>
    %c0_i32 = arith.constant 0 : i32
    %cst_8 = arith.constant 1.000000e+00 : f32
    %14 = vector.broadcast %cst_8 : f32 to vector<8x32xf32>
    %15 = arith.subf %14, %13 : vector<8x32xf32>
    %cst_9 = arith.constant 0.000000e+00 : f32
    %16 = vector.broadcast %cst_9 : f32 to vector<8x32xf32>
    %17 = arith.maximumf %15, %16 : vector<8x32xf32>
    %18 = arith.mulf %17, %17 : vector<8x32xf32>
    %19 = arith.mulf %12, %18 : vector<8x32xf32>
    %cst_10 = arith.constant dense<0.000000e+00> : vector<8xf32>
    %20 = vector.multi_reduction <add>, %19, %cst_10 [1] : vector<8x32xf32> to vector<8xf32>
    %21 = vector.shape_cast %20 : vector<8xf32> to vector<8x1xf32>
    %cst_11 = arith.constant 1.000000e+00 : f32
    %22 = vector.broadcast %cst_11 : f32 to vector<8x1xf32>
    %23 = arith.divf %22, %21 : vector<8x1xf32>
    %24 = vector.broadcast %23 : vector<8x1xf32> to vector<8x32xf32>
    %25 = arith.mulf %19, %24 : vector<8x32xf32>
    %26 = arith.mulf %25, %17 : vector<8x32xf32>
    %27 = arith.addf %13, %26 : vector<8x32xf32>
    %c1_i32 = arith.constant 1 : i32
    %cst_12 = arith.constant 1.000000e+00 : f32
    %28 = vector.broadcast %cst_12 : f32 to vector<8x32xf32>
    %29 = arith.subf %28, %27 : vector<8x32xf32>
    %cst_13 = arith.constant 0.000000e+00 : f32
    %30 = vector.broadcast %cst_13 : f32 to vector<8x32xf32>
    %31 = arith.maximumf %29, %30 : vector<8x32xf32>
    %32 = arith.mulf %31, %31 : vector<8x32xf32>
    %33 = arith.mulf %12, %32 : vector<8x32xf32>
    %cst_14 = arith.constant dense<0.000000e+00> : vector<8xf32>
    %34 = vector.multi_reduction <add>, %33, %cst_14 [1] : vector<8x32xf32> to vector<8xf32>
    %35 = vector.shape_cast %34 : vector<8xf32> to vector<8x1xf32>
    %cst_15 = arith.constant 1.000000e+00 : f32
    %36 = vector.broadcast %cst_15 : f32 to vector<8x1xf32>
    %37 = arith.divf %36, %35 : vector<8x1xf32>
    %38 = vector.broadcast %37 : vector<8x1xf32> to vector<8x32xf32>
    %39 = arith.mulf %33, %38 : vector<8x32xf32>
    %40 = arith.mulf %39, %31 : vector<8x32xf32>
    %41 = arith.addf %27, %40 : vector<8x32xf32>
    %c2_i32 = arith.constant 2 : i32
    %cst_16 = arith.constant 1.000000e+00 : f32
    %42 = vector.broadcast %cst_16 : f32 to vector<8x32xf32>
    %43 = arith.subf %42, %41 : vector<8x32xf32>
    %cst_17 = arith.constant 0.000000e+00 : f32
    %44 = vector.broadcast %cst_17 : f32 to vector<8x32xf32>
    %45 = arith.maximumf %43, %44 : vector<8x32xf32>
    %46 = arith.mulf %45, %45 : vector<8x32xf32>
    %47 = arith.mulf %12, %46 : vector<8x32xf32>
    %cst_18 = arith.constant dense<0.000000e+00> : vector<8xf32>
    %48 = vector.multi_reduction <add>, %47, %cst_18 [1] : vector<8x32xf32> to vector<8xf32>
    %49 = vector.shape_cast %48 : vector<8xf32> to vector<8x1xf32>
    %cst_19 = arith.constant 1.000000e+00 : f32
    %50 = vector.broadcast %cst_19 : f32 to vector<8x1xf32>
    %51 = arith.divf %50, %49 : vector<8x1xf32>
    %52 = vector.broadcast %51 : vector<8x1xf32> to vector<8x32xf32>
    %53 = arith.mulf %47, %52 : vector<8x32xf32>
    %54 = arith.mulf %53, %45 : vector<8x32xf32>
    %55 = arith.addf %41, %54 : vector<8x32xf32>
    %c3_i32 = arith.constant 3 : i32
    %cst_20 = arith.constant 1.000000e+00 : f32
    %56 = vector.broadcast %cst_20 : f32 to vector<8x32xf32>
    %57 = arith.subf %56, %55 : vector<8x32xf32>
    %cst_21 = arith.constant 0.000000e+00 : f32
    %58 = vector.broadcast %cst_21 : f32 to vector<8x32xf32>
    %59 = arith.maximumf %57, %58 : vector<8x32xf32>
    %60 = arith.mulf %59, %59 : vector<8x32xf32>
    %61 = arith.mulf %12, %60 : vector<8x32xf32>
    %cst_22 = arith.constant dense<0.000000e+00> : vector<8xf32>
    %62 = vector.multi_reduction <add>, %61, %cst_22 [1] : vector<8x32xf32> to vector<8xf32>
    %63 = vector.shape_cast %62 : vector<8xf32> to vector<8x1xf32>
    %cst_23 = arith.constant 1.000000e+00 : f32
    %64 = vector.broadcast %cst_23 : f32 to vector<8x1xf32>
    %65 = arith.divf %64, %63 : vector<8x1xf32>
    %66 = vector.broadcast %65 : vector<8x1xf32> to vector<8x32xf32>
    %67 = arith.mulf %61, %66 : vector<8x32xf32>
    %68 = arith.mulf %67, %59 : vector<8x32xf32>
    %69 = arith.addf %55, %68 : vector<8x32xf32>
    %c4_i32 = arith.constant 4 : i32
    %cst_24 = arith.constant 1.000000e+00 : f32
    %70 = vector.broadcast %cst_24 : f32 to vector<8x32xf32>
    %71 = arith.subf %70, %69 : vector<8x32xf32>
    %cst_25 = arith.constant 0.000000e+00 : f32
    %72 = vector.broadcast %cst_25 : f32 to vector<8x32xf32>
    %73 = arith.maximumf %71, %72 : vector<8x32xf32>
    %74 = arith.mulf %73, %73 : vector<8x32xf32>
    %75 = arith.mulf %12, %74 : vector<8x32xf32>
    %cst_26 = arith.constant dense<0.000000e+00> : vector<8xf32>
    %76 = vector.multi_reduction <add>, %75, %cst_26 [1] : vector<8x32xf32> to vector<8xf32>
    %77 = vector.shape_cast %76 : vector<8xf32> to vector<8x1xf32>
    %cst_27 = arith.constant 1.000000e+00 : f32
    %78 = vector.broadcast %cst_27 : f32 to vector<8x1xf32>
    %79 = arith.divf %78, %77 : vector<8x1xf32>
    %80 = vector.broadcast %79 : vector<8x1xf32> to vector<8x32xf32>
    %81 = arith.mulf %75, %80 : vector<8x32xf32>
    %82 = arith.mulf %81, %73 : vector<8x32xf32>
    %83 = arith.addf %69, %82 : vector<8x32xf32>
    %c5_i32 = arith.constant 5 : i32
    %cst_28 = arith.constant 1.000000e+00 : f32
    %84 = vector.broadcast %cst_28 : f32 to vector<8x32xf32>
    %85 = arith.subf %84, %83 : vector<8x32xf32>
    %cst_29 = arith.constant 0.000000e+00 : f32
    %86 = vector.broadcast %cst_29 : f32 to vector<8x32xf32>
    %87 = arith.maximumf %85, %86 : vector<8x32xf32>
    %88 = arith.mulf %87, %87 : vector<8x32xf32>
    %89 = arith.mulf %12, %88 : vector<8x32xf32>
    %cst_30 = arith.constant dense<0.000000e+00> : vector<8xf32>
    %90 = vector.multi_reduction <add>, %89, %cst_30 [1] : vector<8x32xf32> to vector<8xf32>
    %91 = vector.shape_cast %90 : vector<8xf32> to vector<8x1xf32>
    %cst_31 = arith.constant 1.000000e+00 : f32
    %92 = vector.broadcast %cst_31 : f32 to vector<8x1xf32>
    %93 = arith.divf %92, %91 : vector<8x1xf32>
    %94 = vector.broadcast %93 : vector<8x1xf32> to vector<8x32xf32>
    %95 = arith.mulf %89, %94 : vector<8x32xf32>
    %96 = arith.mulf %95, %87 : vector<8x32xf32>
    %97 = arith.addf %83, %96 : vector<8x32xf32>
    %c6_i32 = arith.constant 6 : i32
    %cst_32 = arith.constant 1.000000e+00 : f32
    %98 = vector.broadcast %cst_32 : f32 to vector<8x32xf32>
    %99 = arith.subf %98, %97 : vector<8x32xf32>
    %cst_33 = arith.constant 0.000000e+00 : f32
    %100 = vector.broadcast %cst_33 : f32 to vector<8x32xf32>
    %101 = arith.maximumf %99, %100 : vector<8x32xf32>
    %102 = arith.mulf %101, %101 : vector<8x32xf32>
    %103 = arith.mulf %12, %102 : vector<8x32xf32>
    %cst_34 = arith.constant dense<0.000000e+00> : vector<8xf32>
    %104 = vector.multi_reduction <add>, %103, %cst_34 [1] : vector<8x32xf32> to vector<8xf32>
    %105 = vector.shape_cast %104 : vector<8xf32> to vector<8x1xf32>
    %cst_35 = arith.constant 1.000000e+00 : f32
    %106 = vector.broadcast %cst_35 : f32 to vector<8x1xf32>
    %107 = arith.divf %106, %105 : vector<8x1xf32>
    %108 = vector.broadcast %107 : vector<8x1xf32> to vector<8x32xf32>
    %109 = arith.mulf %103, %108 : vector<8x32xf32>
    %110 = arith.mulf %109, %101 : vector<8x32xf32>
    %111 = arith.addf %97, %110 : vector<8x32xf32>
    %c7_i32 = arith.constant 7 : i32
    %cst_36 = arith.constant 1.000000e+00 : f32
    %112 = vector.broadcast %cst_36 : f32 to vector<8x32xf32>
    %113 = arith.subf %112, %111 : vector<8x32xf32>
    %cst_37 = arith.constant 0.000000e+00 : f32
    %114 = vector.broadcast %cst_37 : f32 to vector<8x32xf32>
    %115 = arith.maximumf %113, %114 : vector<8x32xf32>
    %116 = arith.mulf %115, %115 : vector<8x32xf32>
    %117 = arith.mulf %12, %116 : vector<8x32xf32>
    %cst_38 = arith.constant dense<0.000000e+00> : vector<8xf32>
    %118 = vector.multi_reduction <add>, %117, %cst_38 [1] : vector<8x32xf32> to vector<8xf32>
    %119 = vector.shape_cast %118 : vector<8xf32> to vector<8x1xf32>
    %cst_39 = arith.constant 1.000000e+00 : f32
    %120 = vector.broadcast %cst_39 : f32 to vector<8x1xf32>
    %121 = arith.divf %120, %119 : vector<8x1xf32>
    %122 = vector.broadcast %121 : vector<8x1xf32> to vector<8x32xf32>
    %123 = arith.mulf %117, %122 : vector<8x32xf32>
    %124 = arith.mulf %123, %115 : vector<8x32xf32>
    %125 = arith.addf %111, %124 : vector<8x32xf32>
    %cst_40 = arith.constant 1.000000e+00 : f32
    %126 = vector.broadcast %cst_40 : f32 to vector<8x32xf32>
    %127 = arith.subf %126, %125 : vector<8x32xf32>
    %cst_41 = arith.constant 1.33333337 : f32
    %128 = vector.broadcast %cst_41 : f32 to vector<8x32xf32>
    %129 = arith.mulf %127, %128 : vector<8x32xf32>
    %130 = arith.mulf %0, %129 : vector<8x32xf32>
    %c0_42 = arith.constant 0 : index
    %c0_43 = arith.constant 0 : index
    %131 = vector.load %arg4[%c0_42, %c0_43] : memref<8x32xf32, #tpu.memory_space<vmem>>, vector<8x32xf32>
    tpu.vector_store %arg4[%c0_42, %c0_43], %130 {strides = array<i32>} : memref<8x32xf32, #tpu.memory_space<vmem>>, vector<8x32xf32>,
    return
  }
  func.func @transform_0(%arg0: i32) -> (i32, i32) {
    %c0_i32 = arith.constant 0 : i32
    %c0_i32_0 = arith.constant 0 : i32
    return %arg0, %c0_i32 : i32, i32
  }
  func.func @transform_1(%arg0: i32) -> (i32, i32) {
    %c0_i32 = arith.constant 0 : i32
    %c0_i32_0 = arith.constant 0 : i32
    %c0_i32_1 = arith.constant 0 : i32
    return %c0_i32, %c0_i32_0 : i32, i32
  }
  func.func @transform_2(%arg0: i32) -> (i32, i32) {
    %c0_i32 = arith.constant 0 : i32
    %c0_i32_0 = arith.constant 0 : i32
    %c0_i32_1 = arith.constant 0 : i32
    return %c0_i32, %c0_i32_0 : i32, i32
  }
  func.func @transform_3(%arg0: i32) -> (i32, i32) {
    %c0_i32 = arith.constant 0 : i32
    %c0_i32_0 = arith.constant 0 : i32
    return %arg0, %c0_i32 : i32, i32
  }
}

</mosaic_0001>

<bundles_post_ra>
// kernel: tpu_custom_call.1
= control target key start
LH: loop header
LB: loop body
LE: loop exit
PB: predicated region body
PF: predicated region fallthrough
CT: control target
= control target key end

     0   :  { %8 = vsyncpa [#allocation3], 0  ;;  %s467_s0 = inlined_call_operand.hbm [shape: f32[8,32], index: 0, kind: input, shape index: {}]   ;;  %s468_s1 = inlined_call_operand.hbm [shape: f32[32,32], index: 1, kind: input, shape index: {}]   ;;  %s469_s2 = inlined_call_operand.vmem [shape: f32[1,32], index: 2, kind: input, shape index: {}]   ;;  %s470_s3 = inlined_call_operand.hbm [shape: f32[8,32], index: 3, kind: output, shape index: {}]  }
   0x1   :  { %9 = vsyncpa [#allocation6], 0 }
   0x2   :  { %10 = vsyncpa [#allocation4], 0  ;;  %s367_s12 = smov [#allocation2]   ;;  %s368_s14 = smov [#allocation5]  }
   0x3   :  { %s17_s13 = sshll.u32 %s367_s12, 4  ;;  %s26_s15 = sshll.u32 %s368_s14, 4  ;;  %s18_s13 = int_to_ptr.vmem [resolvable:$true] %s17_s13  ;;  %s395_s15 = int_to_ptr.vmem [resolvable:$true] %s26_s15 }
   0x4   :  { %s295_s18 = scalar_lea.hbm %s467_s0, 128 }
   0x5   :  { %p296_p0 = scmp.ne.s32.totalorder %s467_s0, %s295_s18  ;;  %p299_p1 = scmp.lt.u32.totalorder %s295_s18, %s467_s0 }
   0x7   :  { %p301_p2 = pnand %p299_p1, %p296_p0 }
   0x9   :  { %304 = shalt.err (!%p301_p2)
}
   0xa   :  { %s305_s23 = scalar_lea.vmem %s18_s13, 128  ;;  %p310_p4 = scmp.lt.s32.totalorder %s18_s13, %s18_s13 }
   0xb   :  { %p306_p3 = scmp.ne.s32.totalorder %s18_s13, %s305_s23  ;;  %p311_p5 = scmp.lt.s32.totalorder %s305_s23, %s305_s23 }
   0xd   :  { %p312_p6 = por %p311_p5, %p310_p4 }
   0xf   :  { %p313_p7 = pnand %p312_p6, %p306_p3 }
  0x11   :  { %316 = shalt.err (!%p313_p7)
}
  0x12   :  { %20 = dma.hbm_to_vmem [thread:$0]  %s467_s0, 128, %s18_s13, [#allocation3]  }
  0x13   :  { %s317_s28 = scalar_lea.hbm %s468_s1, 512 }
  0x14   :  { %p318_p8 = scmp.ne.s32.totalorder %s468_s1, %s317_s28  ;;  %p321_p9 = scmp.lt.u32.totalorder %s317_s28, %s468_s1 }
  0x16   :  { %p323_p10 = pnand %p321_p9, %p318_p8 }
  0x18   :  { %326 = shalt.err (!%p323_p10)
}
  0x19   :  { %s327_s6 = scalar_lea.vmem %s395_s15, 512  ;;  %p332_p12 = scmp.lt.s32.totalorder %s395_s15, %s395_s15 }
  0x1a   :  { %p328_p11 = scmp.ne.s32.totalorder %s395_s15, %s327_s6  ;;  %p333_p13 = scmp.lt.s32.totalorder %s327_s6, %s327_s6 }
  0x1c   :  { %p334_p0 = por %p333_p13, %p332_p12 }
  0x1e   :  { %p335_p1 = pnand %p334_p0, %p328_p11 }
  0x20   :  { %338 = shalt.err (!%p335_p1)
}
  0x21   :  { %s369_s0 = smov 128   ;;  %s370_s7 = smov 8  }
  0x22   :  { %32 = dma.hbm_to_vmem [thread:$0]  %s468_s1, 512, %s395_s15, [#allocation6], %s369_s0, %s369_s0, %s370_s7  }
  0x23   :  { %361 = dma.done.wait [#allocation3], 128  }
  0x24   :  { %362 = vsyncadd [#allocation3], 4294967168 }
  0x25   :  { %363 = dma.done.wait [#allocation6], 512  }
  0x26   :  { %364 = vsyncadd [#allocation6], 4294966784  ;;  %v371_v0 = vmov 0.0|0.0   ;;  %vm372_vm0 = vmmov 0   ;;  %v373_v1 = vmov 0.0   ;;  %v42_v2 = vld [vmem:[#allocation5] sm:$0xff] }
  0x27   :  { %263 = vmatprep.subr.bf16.mxu0 %v371_v0  ;;  %260 = vmatprep.mubr.msk.f32.mxu0 %vm372_vm0, %v373_v1  ;;  %v43_v3 = vld [vmem:[#allocation5 + $0x8] sm:$0xff]  ;;  %v44_v4 = vld [vmem:[#allocation5 + $0x10] sm:$0xff]  ;;  %v45_v6 = vld [vmem:[#allocation5 + $0x18] sm:$0xff]  ;;  %vm53_vm1 = vcmask 261120  }
  0x28   :  { %v264_v5 = vpack.c.bf16 %v43_v3, %v42_v2  ;;  %v267_v7 = vpack.c.bf16 %v45_v6, %v44_v4  ;;  %v426_v8 = vld [vmem:[#allocation2] sm:$0xff] }
  0x29   :  { %v245_v9 = vld [vmem:[%s469_s2] ss:$0 sm:$0xff]  ;;  %s374_s2 = smov [#allocation7]  }
  0x2a   :  { %265 = vmatpush3.bf16.msra.mxu0 %v264_v5  ;;  %s235_s11 = sshll.u32 %s374_s2, 4  ;;  %s236_s11 = int_to_ptr.vmem [resolvable:$true] %s235_s11 }
  0x2b   :  { %266 = vmatprep.subr.bf16.mxu0 %v371_v0  ;;  %s339_s12 = scalar_lea.vmem %s236_s11, 128  ;;  %p344_p3 = scmp.lt.s32.totalorder %s236_s11, %s236_s11 }
  0x2c   :  { %p340_p2 = scmp.ne.s32.totalorder %s236_s11, %s339_s12  ;;  %p345_p4 = scmp.lt.s32.totalorder %s339_s12, %s339_s12 }
  0x2e   :  { %268 = vmatpush3.bf16.msra.mxu0 %v267_v7  ;;  %p346_p5 = por %p345_p4, %p344_p3 }
  0x30   :  { %p347_p6 = pnand %p346_p5, %p340_p2 }
  0x31   :  { %261 = vmatmul.mubr.msk.f32.vlgmr.msra.gmra.mrb[0].mxu0 %vm53_vm1, %v426_v8 }
 0x104   :  { %v123_v10 = vpop.f32.mrb[0].mxu0 }
 0x105   :  { %v124_v11 = vadd.f32 %v245_v9, %v123_v10  ;;  %v262_v12 = vpop.f32.mrb[1].mxu0 }
 0x107   :  { %v127_v13 = vsel %vm53_vm1, %v124_v11, -inf }
 0x108   :  { %128 = vmax.xlane.f32.xlu0 %v127_v13 }
 0x195   :  { %v129_v14 = vpop.xlane.xlu0 %128 }
 0x196   :  { %v130_v15 = vsub.f32 %v124_v11, %v129_v14 }
 0x198   :  { %v131_v16 = vmul.f32 2.0, %v130_v15 }
 0x19a   :  { %v132_v17 = vmul.f32 1.442695, %v131_v16 }
 0x19c   :  { %277 = vpow2.f32 %v132_v17 }
 0x1a6   :  { %v434_v18 = vpop.eup %277 }
 0x1a7   :  { %v134_v19 = vsel %vm53_vm1, %v434_v18, 0.0 }
 0x1a8   :  { %135 = vadd.xlane.f32.xlu0 %v134_v19 }
 0x235   :  { %v136_v20 = vpop.xlane.xlu0 %135 }
 0x236   :  { %279 = vrcp.f32 %v136_v20 }
 0x240   :  { %v280_v21 = vpop.eup %279 }
 0x241   :  { %v139_v22 = vmul.f32 %v280_v21, %v434_v18 }
 0x243   :  { %v141_v23 = vsub.f32 1.0, %v139_v22 }
 0x245   :  { %v142_v24 = vmax.f32 %v141_v23, 0.0 }
 0x247   :  { %v143_v25 = vmul.f32 %v142_v24, %v142_v24 }
 0x249   :  { %v144_v26 = vmul.f32 %v434_v18, %v143_v25 }
 0x24b   :  { %v145_v27 = vsel %vm53_vm1, %v144_v26, 0.0 }
 0x24c   :  { %146 = vadd.xlane.f32.xlu1 %v145_v27 }
 0x2d9   :  { %v147_v28 = vpop.xlane.xlu1 %146 }
 0x2da   :  { %281 = vrcp.f32 %v147_v28 }
 0x2e4   :  { %v282_v29 = vpop.eup %281 }
 0x2e5   :  { %v150_v30 = vmul.f32 %v282_v29, %v144_v26 }
 0x2e7   :  { %v151_v31 = vmul.f32 %v150_v30, %v142_v24 }
 0x2e9   :  { %v152_v32 = vadd.f32 %v151_v31, %v139_v22 }
 0x2eb   :  { %v153_v33 = vsub.f32 1.0, %v152_v32 }
 0x2ed   :  { %v154_v34 = vmax.f32 %v153_v33, 0.0 }
 0x2ef   :  { %v155_v35 = vmul.f32 %v154_v34, %v154_v34 }
 0x2f1   :  { %v156_v36 = vmul.f32 %v434_v18, %v155_v35 }
 0x2f3   :  { %v157_v37 = vsel %vm53_vm1, %v156_v36, 0.0 }
 0x2f4   :  { %158 = vadd.xlane.f32.xlu1 %v157_v37 }
 0x381   :  { %v159_v38 = vpop.xlane.xlu1 %158 }
 0x382   :  { %283 = vrcp.f32 %v159_v38 }
 0x38c   :  { %v284_v39 = vpop.eup %283 }
 0x38d   :  { %v162_v40 = vmul.f32 %v284_v39, %v156_v36 }
 0x38f   :  { %v163_v41 = vmul.f32 %v162_v40, %v154_v34 }
 0x391   :  { %v164_v42 = vadd.f32 %v163_v41, %v152_v32 }
 0x393   :  { %v165_v43 = vsub.f32 1.0, %v164_v42 }
 0x395   :  { %v166_v44 = vmax.f32 %v165_v43, 0.0 }
 0x397   :  { %v167_v45 = vmul.f32 %v166_v44, %v166_v44 }
 0x399   :  { %v168_v46 = vmul.f32 %v434_v18, %v167_v45 }
 0x39b   :  { %v169_v47 = vsel %vm53_vm1, %v168_v46, 0.0 }
 0x39c   :  { %170 = vadd.xlane.f32.xlu0 %v169_v47 }
 0x429   :  { %v171_v48 = vpop.xlane.xlu0 %170 }
 0x42a   :  { %285 = vrcp.f32 %v171_v48 }
 0x434   :  { %v286_v49 = vpop.eup %285 }
 0x435   :  { %v174_v50 = vmul.f32 %v286_v49, %v168_v46 }
 0x437   :  { %v175_v51 = vmul.f32 %v174_v50, %v166_v44 }
 0x439   :  { %v176_v52 = vadd.f32 %v175_v51, %v164_v42 }
 0x43b   :  { %v177_v53 = vsub.f32 1.0, %v176_v52 }
 0x43d   :  { %v178_v54 = vmax.f32 %v177_v53, 0.0 }
 0x43f   :  { %v179_v55 = vmul.f32 %v178_v54, %v178_v54 }
 0x441   :  { %v180_v56 = vmul.f32 %v434_v18, %v179_v55 }
 0x443   :  { %v181_v57 = vsel %vm53_vm1, %v180_v56, 0.0 }
 0x444   :  { %182 = vadd.xlane.f32.xlu1 %v181_v57 }
 0x4d1   :  { %v183_v58 = vpop.xlane.xlu1 %182 }
 0x4d2   :  { %287 = vrcp.f32 %v183_v58 }
 0x4dc   :  { %v288_v59 = vpop.eup %287 }
 0x4dd   :  { %v186_v60 = vmul.f32 %v288_v59, %v180_v56 }
 0x4df   :  { %v187_v61 = vmul.f32 %v186_v60, %v178_v54 }
 0x4e1   :  { %v188_v62 = vadd.f32 %v187_v61, %v176_v52 }
 0x4e3   :  { %v189_v63 = vsub.f32 1.0, %v188_v62 }
 0x4e5   :  { %v190_v0 = vmax.f32 %v189_v63, 0.0 }
 0x4e7   :  { %v191_v1 = vmul.f32 %v190_v0, %v190_v0 }
 0x4e9   :  { %v192_v2 = vmul.f32 %v434_v18, %v191_v1 }
 0x4eb   :  { %v193_v3 = vsel %vm53_vm1, %v192_v2, 0.0 }
 0x4ec   :  { %194 = vadd.xlane.f32.xlu0 %v193_v3 }
 0x579   :  { %v195_v4 = vpop.xlane.xlu0 %194 }
 0x57a   :  { %289 = vrcp.f32 %v195_v4 }
 0x584   :  { %v290_v5 = vpop.eup %289 }
 0x585   :  { %v198_v6 = vmul.f32 %v290_v5, %v192_v2 }
 0x587   :  { %v199_v7 = vmul.f32 %v198_v6, %v190_v0 }
 0x589   :  { %v200_v9 = vadd.f32 %v199_v7, %v188_v62 }
 0x58b   :  { %v201_v10 = vsub.f32 1.0, %v200_v9 }
 0x58d   :  { %v202_v11 = vmax.f32 %v201_v10, 0.0 }
 0x58f   :  { %v203_v12 = vmul.f32 %v202_v11, %v202_v11 }
 0x591   :  { %v204_v13 = vmul.f32 %v434_v18, %v203_v12 }
 0x593   :  { %v205_v14 = vsel %vm53_vm1, %v204_v13, 0.0 }
 0x594   :  { %206 = vadd.xlane.f32.xlu1 %v205_v14 }
 0x621   :  { %v207_v15 = vpop.xlane.xlu1 %206 }
 0x622   :  { %291 = vrcp.f32 %v207_v15 }
 0x62c   :  { %v292_v16 = vpop.eup %291 }
 0x62d   :  { %v210_v17 = vmul.f32 %v292_v16, %v204_v13 }
 0x62f   :  { %v211_v19 = vmul.f32 %v210_v17, %v202_v11 }
 0x631   :  { %v212_v20 = vadd.f32 %v211_v19, %v200_v9 }
 0x633   :  { %v213_v21 = vsub.f32 1.0, %v212_v20 }
 0x635   :  { %v214_v22 = vmax.f32 %v213_v21, 0.0 }
 0x637   :  { %v215_v23 = vmul.f32 %v214_v22, %v214_v22 }
 0x639   :  { %v216_v24 = vmul.f32 %v434_v18, %v215_v23 }
 0x63b   :  { %v217_v25 = vsel %vm53_vm1, %v216_v24, 0.0 }
 0x63c   :  { %218 = vadd.xlane.f32.xlu0 %v217_v25 }
 0x6c9   :  { %v219_v26 = vpop.xlane.xlu0 %218 }
 0x6ca   :  { %293 = vrcp.f32 %v219_v26 }
 0x6d4   :  { %v294_v27 = vpop.eup %293 }
 0x6d5   :  { %v222_v28 = vmul.f32 %v294_v27, %v216_v24 }
 0x6d7   :  { %v223_v29 = vmul.f32 %v222_v28, %v214_v22 }
 0x6d9   :  { %v224_v30 = vadd.f32 %v223_v29, %v212_v20 }
 0x6db   :  { %v225_v31 = vsub.f32 1.0, %v224_v30 }
 0x6dd   :  { %v226_v32 = vmul.f32 1.3333334, %v225_v31 }
 0x6df   :  { %v227_v33 = vmul.f32 %v226_v32, %v426_v8 }
 0x6e1   :  { %228 = vst.msk [vmem:[#allocation7] sm:$0xff] %vm53_vm1, %v227_v33 }
 0x6e2   :  { %350 = shalt.err (!%p347_p6)
}
 0x6e3   :  { %s351_s15 = scalar_lea.hbm %s470_s3, 128 }
 0x6e4   :  { %p352_p7 = scmp.ne.s32.totalorder %s470_s3, %s351_s15  ;;  %p355_p8 = scmp.lt.u32.totalorder %s351_s15, %s470_s3 }
 0x6e6   :  { %p357_p9 = pnand %p355_p8, %p352_p7 }
 0x6e8   :  { %360 = shalt.err (!%p357_p9)
}
 0x6e9   :  { %238 = dma.vmem_to_hbm [thread:$0]  %s236_s11, 128, %s470_s3, [#allocation4]  }
 0x6ea   :  { %365 = dma.done.wait [#allocation4], 128  }
 0x6eb   :  { %366 = vsyncadd [#allocation4], 4294967168 }
 0x6ec   :  { %242 = vsyncpa [#allocation3], 1 }
 0x6ed   :  { %243 = vsyncpa [#allocation6], 1 }
 0x6ee   :  { %244 = vsyncpa [#allocation4], 1 }

// kernel: tpu_custom_call.1
= control target key start
LH: loop header
LB: loop body
LE: loop exit
PB: predicated region body
PF: predicated region fallthrough
CT: control target
= control target key end

     0   :  { %8 = vsyncpa [#allocation3], 0  ;;  %s467_s0 = inlined_call_operand.hbm [shape: f32[8,32], index: 0, kind: input, shape index: {}]   ;;  %s468_s1 = inlined_call_operand.hbm [shape: f32[32,32], index: 1, kind: input, shape index: {}]   ;;  %s469_s2 = inlined_call_operand.vmem [shape: f32[1,32], index: 2, kind: input, shape index: {}]   ;;  %s470_s3 = inlined_call_operand.hbm [shape: f32[8,32], index: 3, kind: output, shape index: {}]  }
   0x1   :  { %9 = vsyncpa [#allocation6], 0 }
   0x2   :  { %10 = vsyncpa [#allocation4], 0  ;;  %s367_s12 = smov [#allocation2]   ;;  %s368_s14 = smov [#allocation5]  }
   0x3   :  { %s17_s13 = sshll.u32 %s367_s12, 4  ;;  %s26_s15 = sshll.u32 %s368_s14, 4  ;;  %s18_s13 = int_to_ptr.vmem [resolvable:$true] %s17_s13  ;;  %s395_s15 = int_to_ptr.vmem [resolvable:$true] %s26_s15 }
   0x4   :  { %s295_s18 = scalar_lea.hbm %s467_s0, 128 }
   0x5   :  { %p296_p0 = scmp.ne.s32.totalorder %s467_s0, %s295_s18  ;;  %p299_p1 = scmp.lt.u32.totalorder %s295_s18, %s467_s0 }
   0x7   :  { %p301_p2 = pnand %p299_p1, %p296_p0 }
   0x9   :  { %304 = shalt.err (!%p301_p2)
}
   0xa   :  { %s305_s23 = scalar_lea.vmem %s18_s13, 128  ;;  %p310_p4 = scmp.lt.s32.totalorder %s18_s13, %s18_s13 }
   0xb   :  { %p306_p3 = scmp.ne.s32.totalorder %s18_s13, %s305_s23  ;;  %p311_p5 = scmp.lt.s32.totalorder %s305_s23, %s305_s23 }
   0xd   :  { %p312_p6 = por %p311_p5, %p310_p4 }
   0xf   :  { %p313_p7 = pnand %p312_p6, %p306_p3 }
  0x11   :  { %316 = shalt.err (!%p313_p7)
}
  0x12   :  { %20 = dma.hbm_to_vmem [thread:$0]  %s467_s0, 128, %s18_s13, [#allocation3]  }
  0x13   :  { %s317_s28 = scalar_lea.hbm %s468_s1, 512 }
  0x14   :  { %p318_p8 = scmp.ne.s32.totalorder %s468_s1, %s317_s28  ;;  %p321_p9 = scmp.lt.u32.totalorder %s317_s28, %s468_s1 }
  0x16   :  { %p323_p10 = pnand %p321_p9, %p318_p8 }
  0x18   :  { %326 = shalt.err (!%p323_p10)
}
  0x19   :  { %s327_s6 = scalar_lea.vmem %s395_s15, 512  ;;  %p332_p12 = scmp.lt.s32.totalorder %s395_s15, %s395_s15 }
  0x1a   :  { %p328_p11 = scmp.ne.s32.totalorder %s395_s15, %s327_s6  ;;  %p333_p13 = scmp.lt.s32.totalorder %s327_s6, %s327_s6 }
  0x1c   :  { %p334_p0 = por %p333_p13, %p332_p12 }
  0x1e   :  { %p335_p1 = pnand %p334_p0, %p328_p11 }
  0x20   :  { %338 = shalt.err (!%p335_p1)
}
  0x21   :  { %s369_s0 = smov 128   ;;  %s370_s7 = smov 8  }
  0x22   :  { %32 = dma.hbm_to_vmem [thread:$0]  %s468_s1, 512, %s395_s15, [#allocation6], %s369_s0, %s369_s0, %s370_s7  }
  0x23   :  { %361 = dma.done.wait [#allocation3], 128  }
  0x24   :  { %362 = vsyncadd [#allocation3], 4294967168 }
  0x25   :  { %363 = dma.done.wait [#allocation6], 512  }
  0x26   :  { %364 = vsyncadd [#allocation6], 4294966784  ;;  %v371_v0 = vmov 0.0|0.0   ;;  %vm372_vm0 = vmmov 0   ;;  %v373_v1 = vmov 0.0   ;;  %v42_v2 = vld [vmem:[#allocation5] sm:$0xff] }
  0x27   :  { %263 = vmatprep.subr.bf16.mxu0 %v371_v0  ;;  %260 = vmatprep.mubr.msk.f32.mxu0 %vm372_vm0, %v373_v1  ;;  %v43_v3 = vld [vmem:[#allocation5 + $0x8] sm:$0xff]  ;;  %v44_v4 = vld [vmem:[#allocation5 + $0x10] sm:$0xff]  ;;  %v45_v6 = vld [vmem:[#allocation5 + $0x18] sm:$0xff]  ;;  %vm53_vm1 = vcmask 261120  }
  0x28   :  { %v264_v5 = vpack.c.bf16 %v43_v3, %v42_v2  ;;  %v267_v7 = vpack.c.bf16 %v45_v6, %v44_v4  ;;  %v426_v8 = vld [vmem:[#allocation2] sm:$0xff] }
  0x29   :  { %v245_v9 = vld [vmem:[%s469_s2] ss:$0 sm:$0xff]  ;;  %s374_s2 = smov [#allocation7]  }
  0x2a   :  { %265 = vmatpush3.bf16.msra.mxu0 %v264_v5  ;;  %s235_s11 = sshll.u32 %s374_s2, 4  ;;  %s236_s11 = int_to_ptr.vmem [resolvable:$true] %s235_s11 }
  0x2b   :  { %266 = vmatprep.subr.bf16.mxu0 %v371_v0  ;;  %s339_s12 = scalar_lea.vmem %s236_s11, 128  ;;  %p344_p3 = scmp.lt.s32.totalorder %s236_s11, %s236_s11 }
  0x2c   :  { %p340_p2 = scmp.ne.s32.totalorder %s236_s11, %s339_s12  ;;  %p345_p4 = scmp.lt.s32.totalorder %s339_s12, %s339_s12 }
  0x2e   :  { %268 = vmatpush3.bf16.msra.mxu0 %v267_v7  ;;  %p346_p5 = por %p345_p4, %p344_p3 }
  0x30   :  { %p347_p6 = pnand %p346_p5, %p340_p2 }
  0x31   :  { %261 = vmatmul.mubr.msk.f32.vlgmr.msra.gmra.mrb[0].mxu0 %vm53_vm1, %v426_v8 }
 0x104   :  { %v123_v10 = vpop.f32.mrb[0].mxu0 }
 0x105   :  { %v124_v11 = vadd.f32 %v245_v9, %v123_v10  ;;  %v262_v12 = vpop.f32.mrb[1].mxu0 }
 0x107   :  { %v127_v13 = vsel %vm53_vm1, %v124_v11, -inf }
 0x108   :  { %128 = vmax.xlane.f32.xlu0 %v127_v13 }
 0x195   :  { %v129_v14 = vpop.xlane.xlu0 %128 }
 0x196   :  { %v130_v15 = vsub.f32 %v124_v11, %v129_v14 }
 0x198   :  { %v131_v16 = vmul.f32 2.0, %v130_v15 }
 0x19a   :  { %v132_v17 = vmul.f32 1.442695, %v131_v16 }
 0x19c   :  { %277 = vpow2.f32 %v132_v17 }
 0x1a6   :  { %v434_v18 = vpop.eup %277 }
 0x1a7   :  { %v134_v19 = vsel %vm53_vm1, %v434_v18, 0.0 }
 0x1a8   :  { %135 = vadd.xlane.f32.xlu0 %v134_v19 }
 0x235   :  { %v136_v20 = vpop.xlane.xlu0 %135 }
 0x236   :  { %279 = vrcp.f32 %v136_v20 }
 0x240   :  { %v280_v21 = vpop.eup %279 }
 0x241   :  { %v139_v22 = vmul.f32 %v280_v21, %v434_v18 }
 0x243   :  { %v141_v23 = vsub.f32 1.0, %v139_v22 }
 0x245   :  { %v142_v24 = vmax.f32 %v141_v23, 0.0 }
 0x247   :  { %v143_v25 = vmul.f32 %v142_v24, %v142_v24 }
 0x249   :  { %v144_v26 = vmul.f32 %v434_v18, %v143_v25 }
 0x24b   :  { %v145_v27 = vsel %vm53_vm1, %v144_v26, 0.0 }
 0x24c   :  { %146 = vadd.xlane.f32.xlu1 %v145_v27 }
 0x2d9   :  { %v147_v28 = vpop.xlane.xlu1 %146 }
 0x2da   :  { %281 = vrcp.f32 %v147_v28 }
 0x2e4   :  { %v282_v29 = vpop.eup %281 }
 0x2e5   :  { %v150_v30 = vmul.f32 %v282_v29, %v144_v26 }
 0x2e7   :  { %v151_v31 = vmul.f32 %v150_v30, %v142_v24 }
 0x2e9   :  { %v152_v32 = vadd.f32 %v151_v31, %v139_v22 }
 0x2eb   :  { %v153_v33 = vsub.f32 1.0, %v152_v32 }
 0x2ed   :  { %v154_v34 = vmax.f32 %v153_v33, 0.0 }
 0x2ef   :  { %v155_v35 = vmul.f32 %v154_v34, %v154_v34 }
 0x2f1   :  { %v156_v36 = vmul.f32 %v434_v18, %v155_v35 }
 0x2f3   :  { %v157_v37 = vsel %vm53_vm1, %v156_v36, 0.0 }
 0x2f4   :  { %158 = vadd.xlane.f32.xlu1 %v157_v37 }
 0x381   :  { %v159_v38 = vpop.xlane.xlu1 %158 }
 0x382   :  { %283 = vrcp.f32 %v159_v38 }
 0x38c   :  { %v284_v39 = vpop.eup %283 }
 0x38d   :  { %v162_v40 = vmul.f32 %v284_v39, %v156_v36 }
 0x38f   :  { %v163_v41 = vmul.f32 %v162_v40, %v154_v34 }
 0x391   :  { %v164_v42 = vadd.f32 %v163_v41, %v152_v32 }
 0x393   :  { %v165_v43 = vsub.f32 1.0, %v164_v42 }
 0x395   :  { %v166_v44 = vmax.f32 %v165_v43, 0.0 }
 0x397   :  { %v167_v45 = vmul.f32 %v166_v44, %v166_v44 }
 0x399   :  { %v168_v46 = vmul.f32 %v434_v18, %v167_v45 }
 0x39b   :  { %v169_v47 = vsel %vm53_vm1, %v168_v46, 0.0 }
 0x39c   :  { %170 = vadd.xlane.f32.xlu0 %v169_v47 }
 0x429   :  { %v171_v48 = vpop.xlane.xlu0 %170 }
 0x42a   :  { %285 = vrcp.f32 %v171_v48 }
 0x434   :  { %v286_v49 = vpop.eup %285 }
 0x435   :  { %v174_v50 = vmul.f32 %v286_v49, %v168_v46 }
 0x437   :  { %v175_v51 = vmul.f32 %v174_v50, %v166_v44 }
 0x439   :  { %v176_v52 = vadd.f32 %v175_v51, %v164_v42 }
 0x43b   :  { %v177_v53 = vsub.f32 1.0, %v176_v52 }
 0x43d   :  { %v178_v54 = vmax.f32 %v177_v53, 0.0 }
 0x43f   :  { %v179_v55 = vmul.f32 %v178_v54, %v178_v54 }
 0x441   :  { %v180_v56 = vmul.f32 %v434_v18, %v179_v55 }
 0x443   :  { %v181_v57 = vsel %vm53_vm1, %v180_v56, 0.0 }
 0x444   :  { %182 = vadd.xlane.f32.xlu1 %v181_v57 }
 0x4d1   :  { %v183_v58 = vpop.xlane.xlu1 %182 }
 0x4d2   :  { %287 = vrcp.f32 %v183_v58 }
 0x4dc   :  { %v288_v59 = vpop.eup %287 }
 0x4dd   :  { %v186_v60 = vmul.f32 %v288_v59, %v180_v56 }
 0x4df   :  { %v187_v61 = vmul.f32 %v186_v60, %v178_v54 }
 0x4e1   :  { %v188_v62 = vadd.f32 %v187_v61, %v176_v52 }
 0x4e3   :  { %v189_v63 = vsub.f32 1.0, %v188_v62 }
 0x4e5   :  { %v190_v0 = vmax.f32 %v189_v63, 0.0 }
 0x4e7   :  { %v191_v1 = vmul.f32 %v190_v0, %v190_v0 }
 0x4e9   :  { %v192_v2 = vmul.f32 %v434_v18, %v191_v1 }
 0x4eb   :  { %v193_v3 = vsel %vm53_vm1, %v192_v2, 0.0 }
 0x4ec   :  { %194 = vadd.xlane.f32.xlu0 %v193_v3 }
 0x579   :  { %v195_v4 = vpop.xlane.xlu0 %194 }
 0x57a   :  { %289 = vrcp.f32 %v195_v4 }
 0x584   :  { %v290_v5 = vpop.eup %289 }
 0x585   :  { %v198_v6 = vmul.f32 %v290_v5, %v192_v2 }
 0x587   :  { %v199_v7 = vmul.f32 %v198_v6, %v190_v0 }
 0x589   :  { %v200_v9 = vadd.f32 %v199_v7, %v188_v62 }
 0x58b   :  { %v201_v10 = vsub.f32 1.0, %v200_v9 }
 0x58d   :  { %v202_v11 = vmax.f32 %v201_v10, 0.0 }
 0x58f   :  { %v203_v12 = vmul.f32 %v202_v11, %v202_v11 }
 0x591   :  { %v204_v13 = vmul.f32 %v434_v18, %v203_v12 }
 0x593   :  { %v205_v14 = vsel %vm53_vm1, %v204_v13, 0.0 }
 0x594   :  { %206 = vadd.xlane.f32.xlu1 %v205_v14 }
 0x621   :  { %v207_v15 = vpop.xlane.xlu1 %206 }
 0x622   :  { %291 = vrcp.f32 %v207_v15 }
 0x62c   :  { %v292_v16 = vpop.eup %291 }
 0x62d   :  { %v210_v17 = vmul.f32 %v292_v16, %v204_v13 }
 0x62f   :  { %v211_v19 = vmul.f32 %v210_v17, %v202_v11 }
 0x631   :  { %v212_v20 = vadd.f32 %v211_v19, %v200_v9 }
 0x633   :  { %v213_v21 = vsub.f32 1.0, %v212_v20 }
 0x635   :  { %v214_v22 = vmax.f32 %v213_v21, 0.0 }
 0x637   :  { %v215_v23 = vmul.f32 %v214_v22, %v214_v22 }
 0x639   :  { %v216_v24 = vmul.f32 %v434_v18, %v215_v23 }
 0x63b   :  { %v217_v25 = vsel %vm53_vm1, %v216_v24, 0.0 }
 0x63c   :  { %218 = vadd.xlane.f32.xlu0 %v217_v25 }
 0x6c9   :  { %v219_v26 = vpop.xlane.xlu0 %218 }
 0x6ca   :  { %293 = vrcp.f32 %v219_v26 }
 0x6d4   :  { %v294_v27 = vpop.eup %293 }
 0x6d5   :  { %v222_v28 = vmul.f32 %v294_v27, %v216_v24 }
 0x6d7   :  { %v223_v29 = vmul.f32 %v222_v28, %v214_v22 }
 0x6d9   :  { %v224_v30 = vadd.f32 %v223_v29, %v212_v20 }
 0x6db   :  { %v225_v31 = vsub.f32 1.0, %v224_v30 }
 0x6dd   :  { %v226_v32 = vmul.f32 1.3333334, %v225_v31 }
 0x6df   :  { %v227_v33 = vmul.f32 %v226_v32, %v426_v8 }
 0x6e1   :  { %228 = vst.msk [vmem:[#allocation7] sm:$0xff] %vm53_vm1, %v227_v33 }
 0x6e2   :  { %350 = shalt.err (!%p347_p6)
}
 0x6e3   :  { %s351_s15 = scalar_lea.hbm %s470_s3, 128 }
 0x6e4   :  { %p352_p7 = scmp.ne.s32.totalorder %s470_s3, %s351_s15  ;;  %p355_p8 = scmp.lt.u32.totalorder %s351_s15, %s470_s3 }
 0x6e6   :  { %p357_p9 = pnand %p355_p8, %p352_p7 }
 0x6e8   :  { %360 = shalt.err (!%p357_p9)
}
 0x6e9   :  { %238 = dma.vmem_to_hbm [thread:$0]  %s236_s11, 128, %s470_s3, [#allocation4]  }
 0x6ea   :  { %365 = dma.done.wait [#allocation4], 128  }
 0x6eb   :  { %366 = vsyncadd [#allocation4], 4294967168 }
 0x6ec   :  { %242 = vsyncpa [#allocation3], 1 }
 0x6ed   :  { %243 = vsyncpa [#allocation6], 1 }
 0x6ee   :  { %244 = vsyncpa [#allocation4], 1 }

</bundles_post_ra>
